<compile_context>
chip_gen: v7x
topology: tpu7x:2x2x1
jax: 0.10.0
libtpu: 0.0.40
codegen_flags: <defaults>
</compile_context>

<pallas_src>
import functools

import jax
import jax.numpy as jnp
from jax.experimental import pallas as pl
from jax.experimental.pallas import tpu as pltpu

LANES = 128        # TPU vreg lane width: hidden/weight planes are padded to this.
SUBLANE_PAD = 16   # batch rows padded to a multiple of this (covers f32 (8) & bf16 (16)).


def _round_up(x, m):
    return pl.cdiv(x, m) * m


def qnetwork_kernel(x_ref, w_ref, out_ref, *, hidden):
    """x_ref:   (tb, state_pad)  zero-padded f32 states
       w_ref:   (3, 128, 128)    weight planes; row `hidden` of each plane = bias
       out_ref: (tb, out_pad)    Q-values in cols [0:action_dim], zeros elsewhere."""
    k1 = x_ref.shape[-1]

    # fc1 + ReLU. Only the first `k1` rows of plane 0 participate (rest are zero);
    # weights are read at their point of use so live ranges stay short.
    w1 = w_ref[0, :k1, :]
    h = jnp.dot(x_ref[...].astype(w1.dtype), w1, preferred_element_type=jnp.float32)
    h = jnp.maximum(h + w_ref[0, hidden:hidden + 1, :], 0.0)

    # fc2 + ReLU. Columns >= hidden of h are exactly zero, so the bias row stored
    # inside plane 1 contributes nothing through the matmul (bias added explicitly).
    h = jnp.dot(h.astype(w1.dtype), w_ref[1], preferred_element_type=jnp.float32)
    h = jnp.maximum(h + w_ref[1, hidden:hidden + 1, :], 0.0)

    # fc3 (no activation).
    q = jnp.dot(h.astype(w1.dtype), w_ref[2], preferred_element_type=jnp.float32)
    q = q + w_ref[2, hidden:hidden + 1, :]

    out_ref[...] = q[:, :out_ref.shape[-1]].astype(out_ref.dtype)


def init_params(key, state_dim, action_dim, hidden=64):
    """nn.Linear-style init: U(-1/sqrt(fan_in), 1/sqrt(fan_in)); weights stored (in, out)."""
    ks = jax.random.split(key, 6)

    def linear(kw, kb, fan_in, fan_out):
        bound = 1.0 / jnp.sqrt(jnp.float32(fan_in))
        w = jax.random.uniform(kw, (fan_in, fan_out), jnp.float32, -bound, bound)
        b = jax.random.uniform(kb, (fan_out,), jnp.float32, -bound, bound)
        return w, b

    w1, b1 = linear(ks[0], ks[1], state_dim, hidden)
    w2, b2 = linear(ks[2], ks[3], hidden, hidden)
    w3, b3 = linear(ks[4], ks[5], hidden, action_dim)
    return {"w1": w1, "b1": b1, "w2": w2, "b2": b2, "w3": w3, "b3": b3}


def pack_params(params, state_dim, hidden, action_dim, dtype=jnp.bfloat16):
    """Fold the 6 weight/bias tensors into one (3, 128, 128) slab (off the hot path).

    Plane l holds W_l in rows [0:fan_in_l] ((in, out) layout) and b_l in row
    `hidden`. Everything else is zero, so padded lanes stay zero through the
    network and the bias rows never leak through the matmuls (their matching
    activation columns are exactly zero)."""
    state_pad = _round_up(state_dim, 8)
    assert state_pad <= hidden < LANES and action_dim <= LANES

    slab = jnp.zeros((3, LANES, LANES), jnp.float32)
    slab = slab.at[0, :state_dim, :hidden].set(params["w1"])
    slab = slab.at[0, hidden, :hidden].set(params["b1"])
    slab = slab.at[1, :hidden, :hidden].set(params["w2"])
    slab = slab.at[1, hidden, :hidden].set(params["b2"])
    slab = slab.at[2, :hidden, :action_dim].set(params["w3"])
    slab = slab.at[2, hidden, :action_dim].set(params["b3"])
    return slab.astype(dtype)


@functools.partial(jax.jit,
                   static_argnames=("state_dim", "action_dim", "hidden", "tile_b"))
def qnetwork_forward(x, slab, *, state_dim, action_dim, hidden=64, tile_b=1024):
    """x: (batch, state_dim) f32. slab: (3, 128, 128) packed weights (bf16 or f32).
    Returns (batch, action_dim) f32 Q-values."""
    batch = x.shape[0]
    assert x.shape[1] == state_dim

    state_pad = _round_up(state_dim, 8)   # narrow input: full-array last dim, no 128 pad
    out_pad = _round_up(action_dim, 8)    # narrow output: full-array last dim, no 128 pad

    # Sublane-align the batch and pick the batch tile (weights stay VMEM-resident).
    b_min = _round_up(batch, SUBLANE_PAD)
    tb = min(tile_b, b_min)
    # v7x megacore: with enough work, make sure the grid has >= 2 tiles so the
    # second TensorCore isn't idle.
    if b_min >= 256 and b_min // tb < 2:
        tb = _round_up(pl.cdiv(b_min, 2), SUBLANE_PAD)
    b_pad = _round_up(b_min, tb)
    grid = (b_pad // tb,)

    # Single cheap zero-pad on the wrapper side (rows to b_pad, lanes to state_pad).
    x_pad = jnp.pad(x, ((0, b_pad - batch), (0, state_pad - state_dim)))

    flops = 2 * b_pad * (state_pad * LANES + 2 * LANES * LANES)
    bytes_accessed = (x_pad.size * x_pad.dtype.itemsize
                      + slab.size * slab.dtype.itemsize
                      + b_pad * out_pad * 4)

    out_padded = pl.pallas_call(
        functools.partial(qnetwork_kernel, hidden=hidden),
        out_shape=jax.ShapeDtypeStruct((b_pad, out_pad), jnp.float32),
        grid=grid,
        in_specs=[
            pl.BlockSpec((tb, state_pad), lambda i: (i, 0)),       # stream batch tiles
            pl.BlockSpec((3, LANES, LANES), lambda i: (0, 0, 0)),  # weights resident
        ],
        out_specs=pl.BlockSpec((tb, out_pad), lambda i: (i, 0)),
        compiler_params=pltpu.CompilerParams(
            dimension_semantics=("parallel",)),
        cost_estimate=pl.CostEstimate(
            flops=flops, transcendentals=0, bytes_accessed=bytes_accessed),
    )(x_pad, slab)

    return out_padded[:batch, :action_dim]


def qnetwork_ref(x, p):
    """Pure-JAX reference for correctness check."""
    h1 = jnp.maximum(x @ p["w1"] + p["b1"], 0.0)
    h2 = jnp.maximum(h1 @ p["w2"] + p["b2"], 0.0)
    return h2 @ p["w3"] + p["b3"]


if __name__ == "__main__":
    # CartPole-v1: state_dim=4, action_dim=2. Small batch of states.
    state_dim, action_dim, hidden, batch = 4, 2, 64, 2

    key = jax.random.PRNGKey(0)
    k_params, k_x, k_x2 = jax.random.split(key, 3)
    params = init_params(k_params, state_dim, action_dim, hidden)
    x = jax.random.normal(k_x, (batch, state_dim), jnp.float32)

    ref = qnetwork_ref(x, params)

    # f32 slab: matches the XLA reference to fp tolerance.
    slab_f32 = pack_params(params, state_dim, hidden, action_dim, jnp.float32)
    out_f32 = jax.block_until_ready(
        qnetwork_forward(x, slab_f32, state_dim=state_dim, action_dim=action_dim,
                         hidden=hidden))
    assert out_f32.shape == (batch, action_dim)
    assert jnp.allclose(out_f32, ref, atol=1e-5, rtol=1e-5), "f32 mismatch vs reference"

    # bf16 slab (default production path): bf16 MXU operands, f32 accumulation.
    slab_bf16 = pack_params(params, state_dim, hidden, action_dim)
    out_bf16 = jax.block_until_ready(
        qnetwork_forward(x, slab_bf16, state_dim=state_dim, action_dim=action_dim,
                         hidden=hidden))
    assert out_bf16.shape == (batch, action_dim)
    assert jnp.allclose(out_bf16, ref, atol=5e-2, rtol=5e-2), "bf16 mismatch vs reference"

    # Multi-tile path (grid > 1): non-multiple batch + small tile to exercise the
    # batch tiling, padding, and trailing-slice logic.
    x_big = jax.random.normal(k_x2, (130, state_dim), jnp.float32)
    ref_big = qnetwork_ref(x_big, params)
    out_big = jax.block_until_ready(
        qnetwork_forward(x_big, slab_f32, state_dim=state_dim, action_dim=action_dim,
                         hidden=hidden, tile_b=64))
    assert out_big.shape == (130, action_dim)
    assert jnp.allclose(out_big, ref_big, atol=1e-5, rtol=1e-5), "multi-tile mismatch"

    print("KERNEL_OK")
</pallas_src>

<mosaic_0001>
module attributes {stable_mosaic.version = 11 : i64} {
  func.func @qnetwork_kernel(%arg0: i32, %arg1: memref<16x8xf32, #tpu.memory_space<vmem>>, %arg2: memref<3x128x128xf32, #tpu.memory_space<vmem>>, %arg3: memref<16x8xf32, #tpu.memory_space<vmem>>) attributes {dimension_semantics = [#tpu.dimension_semantics<parallel>], iteration_bounds = array<i64: 1>, scalar_prefetch = 0 : i64, scratch_operands = 0 : i64, tpu.core_type = #tpu.core_type<tc>, window_params = [{transform_indices = @transform_0, window_bounds = array<i64: 16, 8>}, {pipeline_mode = #tpu.pipeline_mode<synchronous>, transform_indices = @transform_1, window_bounds = array<i64: 3, 128, 128>}, {transform_indices = @transform_2, window_bounds = array<i64: 16, 8>}]} {
    %c0 = arith.constant 0 : index
    %c0_0 = arith.constant 0 : index
    %c0_1 = arith.constant 0 : index
    %0 = vector.load %arg2[%c0, %c0_0, %c0_1] : memref<3x128x128xf32, #tpu.memory_space<vmem>>, vector<1x8x128xf32>
    %1 = vector.shape_cast %0 : vector<1x8x128xf32> to vector<8x128xf32>
    %c0_2 = arith.constant 0 : index
    %c0_3 = arith.constant 0 : index
    %2 = vector.load %arg1[%c0_2, %c0_3] : memref<16x8xf32, #tpu.memory_space<vmem>>, vector<16x8xf32>
    %cst = arith.constant dense<0.000000e+00> : vector<16x128xf32>
    %3 = tpu.matmul %2, %1, %cst {dimension_numbers = #tpu.dot_dimension_numbers<[1], [0], [0], [1], [0, 0, 1, 1], [], []>} : vector<16x8xf32>, vector<8x128xf32>, vector<16x128xf32> -> vector<16x128xf32>
    %c0_4 = arith.constant 0 : index
    %c64 = arith.constant 64 : index
    %c0_5 = arith.constant 0 : index
    %4 = vector.load %arg2[%c0_4, %c64, %c0_5] : memref<3x128x128xf32, #tpu.memory_space<vmem>>, vector<1x1x128xf32>
    %5 = vector.shape_cast %4 : vector<1x1x128xf32> to vector<1x128xf32>
    %6 = vector.broadcast %5 : vector<1x128xf32> to vector<16x128xf32>
    %7 = arith.addf %3, %6 : vector<16x128xf32>
    %cst_6 = arith.constant 0.000000e+00 : f32
    %8 = vector.broadcast %cst_6 : f32 to vector<16x128xf32>
    %9 = arith.maximumf %7, %8 : vector<16x128xf32>
    %c1 = arith.constant 1 : index
    %c0_7 = arith.constant 0 : index
    %c0_8 = arith.constant 0 : index
    %10 = vector.load %arg2[%c1, %c0_7, %c0_8] : memref<3x128x128xf32, #tpu.memory_space<vmem>>, vector<1x128x128xf32>
    %11 = vector.shape_cast %10 : vector<1x128x128xf32> to vector<128x128xf32>
    %cst_9 = arith.constant dense<0.000000e+00> : vector<16x128xf32>
    %12 = tpu.matmul %9, %11, %cst_9 {dimension_numbers = #tpu.dot_dimension_numbers<[1], [0], [0], [1], [0, 0, 1, 1], [], []>} : vector<16x128xf32>, vector<128x128xf32>, vector<16x128xf32> -> vector<16x128xf32>
    %c1_10 = arith.constant 1 : index
    %c64_11 = arith.constant 64 : index
    %c0_12 = arith.constant 0 : index
    %13 = vector.load %arg2[%c1_10, %c64_11, %c0_12] : memref<3x128x128xf32, #tpu.memory_space<vmem>>, vector<1x1x128xf32>
    %14 = vector.shape_cast %13 : vector<1x1x128xf32> to vector<1x128xf32>
    %15 = vector.broadcast %14 : vector<1x128xf32> to vector<16x128xf32>
    %16 = arith.addf %12, %15 : vector<16x128xf32>
    %cst_13 = arith.constant 0.000000e+00 : f32
    %17 = vector.broadcast %cst_13 : f32 to vector<16x128xf32>
    %18 = arith.maximumf %16, %17 : vector<16x128xf32>
    %c2 = arith.constant 2 : index
    %c0_14 = arith.constant 0 : index
    %c0_15 = arith.constant 0 : index
    %19 = vector.load %arg2[%c2, %c0_14, %c0_15] : memref<3x128x128xf32, #tpu.memory_space<vmem>>, vector<1x128x128xf32>
    %20 = vector.shape_cast %19 : vector<1x128x128xf32> to vector<128x128xf32>
    %cst_16 = arith.constant dense<0.000000e+00> : vector<16x128xf32>
    %21 = tpu.matmul %18, %20, %cst_16 {dimension_numbers = #tpu.dot_dimension_numbers<[1], [0], [0], [1], [0, 0, 1, 1], [], []>} : vector<16x128xf32>, vector<128x128xf32>, vector<16x128xf32> -> vector<16x128xf32>
    %c2_17 = arith.constant 2 : index
    %c64_18 = arith.constant 64 : index
    %c0_19 = arith.constant 0 : index
    %22 = vector.load %arg2[%c2_17, %c64_18, %c0_19] : memref<3x128x128xf32, #tpu.memory_space<vmem>>, vector<1x1x128xf32>
    %23 = vector.shape_cast %22 : vector<1x1x128xf32> to vector<1x128xf32>
    %24 = vector.broadcast %23 : vector<1x128xf32> to vector<16x128xf32>
    %25 = arith.addf %21, %24 : vector<16x128xf32>
    %26 = vector.extract_strided_slice %25 {offsets = [0, 0], sizes = [16, 8], strides = [1, 1]} : vector<16x128xf32> to vector<16x8xf32>
    %c0_20 = arith.constant 0 : index
    %c0_21 = arith.constant 0 : index
    %27 = vector.load %arg3[%c0_20, %c0_21] : memref<16x8xf32, #tpu.memory_space<vmem>>, vector<16x8xf32>
    tpu.vector_store %arg3[%c0_20, %c0_21], %26 {strides = array<i32>} : memref<16x8xf32, #tpu.memory_space<vmem>>, vector<16x8xf32>,
    return
  }
  func.func @transform_0(%arg0: i32) -> (i32, i32) {
    %c0_i32 = arith.constant 0 : i32
    %c0_i32_0 = arith.constant 0 : i32
    return %arg0, %c0_i32 : i32, i32
  }
  func.func @transform_1(%arg0: i32) -> (i32, i32, i32) {
    %c0_i32 = arith.constant 0 : i32
    %c0_i32_0 = arith.constant 0 : i32
    %c0_i32_1 = arith.constant 0 : i32
    %c0_i32_2 = arith.constant 0 : i32
    return %c0_i32, %c0_i32_0, %c0_i32_1 : i32, i32, i32
  }
  func.func @transform_2(%arg0: i32) -> (i32, i32) {
    %c0_i32 = arith.constant 0 : i32
    %c0_i32_0 = arith.constant 0 : i32
    return %arg0, %c0_i32 : i32, i32
  }
}

</mosaic_0001>

<bundles_post_ra>
// kernel: qnetwork_forward.1
= control target key start
LH: loop header
LB: loop body
LE: loop exit
PB: predicated region body
PF: predicated region fallthrough
CT: control target
= control target key end

     0   :  { %7 = vsyncpa [#allocation3], 0  ;;  %s530_s9 = smov [#allocation2]   ;;  %s576_s0 = inlined_call_operand.vmem [shape: f32[16,8], index: 0, kind: input, shape index: {}]   ;;  %s577_s1 = inlined_call_operand.hbm [shape: f32[3,128,128], index: 1, kind: input, shape index: {}]   ;;  %s578_s2 = inlined_call_operand.vmem [shape: f32[16,8], index: 2, kind: output, shape index: {}]  }
   0x1   :  { %s15_s10 = sshll.u32 %s530_s9, 4  ;;  %s506_s13 = scalar_lea.hbm %s577_s1, 6144  ;;  %s16_s10 = int_to_ptr.vmem [resolvable:$true] %s15_s10 }
   0x2   :  { %p507_p0 = scmp.ne.s32.totalorder %s577_s1, %s506_s13  ;;  %p510_p1 = scmp.lt.u32.totalorder %s506_s13, %s577_s1 }
   0x4   :  { %p512_p2 = pnand %p510_p1, %p507_p0 }
   0x6   :  { %515 = shalt.err (!%p512_p2)
}
   0x7   :  { %s516_s18 = scalar_lea.vmem %s16_s10, 6144  ;;  %p521_p4 = scmp.lt.s32.totalorder %s16_s10, %s16_s10 }
   0x8   :  { %p517_p3 = scmp.ne.s32.totalorder %s16_s10, %s516_s18  ;;  %p522_p5 = scmp.lt.s32.totalorder %s516_s18, %s516_s18 }
   0xa   :  { %p523_p6 = por %p522_p5, %p521_p4 }
   0xc   :  { %p524_p7 = pnand %p523_p6, %p517_p3 }
   0xe   :  { %527 = shalt.err (!%p524_p7)
}
   0xf   :  { %s531_s19 = smov 128   ;;  %s532_s20 = smov 8  }
  0x10   :  { %21 = dma.hbm_to_vmem [thread:$0]  %s577_s1, 6144, %s16_s10, [#allocation3], %s531_s19, %s531_s19, %s532_s20  }
  0x11   :  { %528 = dma.done.wait [#allocation3], 6144  }
  0x12   :  { %529 = vsyncadd [#allocation3], 4294961152  ;;  %vm33_vm0 = vcmask 64512   ;;  %v25_v0 = vld [vmem:[#allocation2] sm:$0xff]  ;;  %v27_v2 = vld [vmem:[%s576_s0 + $0x8] sm:$0xff] }
  0x13   :  { %v26_v1 = vld [vmem:[%s576_s0] sm:$0xff]  ;;  %364 = vmatprep.subr.mxu0 %v25_v0  ;;  %v119_v4 = vld [vmem:[#allocation2 + $0x88] sm:$0xff]  ;;  %v120_v5 = vld [vmem:[#allocation2 + $0x90] sm:$0xff] }
  0x14   :  { %366 = vmatprep.mubr.msk.f32.mxu0 %vm33_vm0, %v26_v1  ;;  %v118_v3 = vld [vmem:[#allocation2 + $0x80] sm:$0xff]  ;;  %365 = vmatpush3.msra.mxu0 %v25_v0  ;;  %v121_v7 = vld [vmem:[#allocation2 + $0x98] sm:$0xff]  ;;  %v123_v10 = vld [vmem:[#allocation2 + $0xa8] sm:$0xff] }
  0x15   :  { %v439_v6 = vpack.c.bf16 %v119_v4, %v118_v3  ;;  %367 = vmatmul.mubr.msk.f32.vlgmr.msra.gmra.mrb[0].mxu0 %vm33_vm0, %v27_v2  ;;  %v443_v8 = vpack.c.bf16 %v121_v7, %v120_v5  ;;  %v122_v9 = vld [vmem:[#allocation2 + $0xa0] sm:$0xff]  ;;  %v124_v12 = vld [vmem:[#allocation2 + $0xb0] sm:$0xff]  ;;  %v125_v13 = vld [vmem:[#allocation2 + $0xb8] sm:$0xff] }
  0x16   :  { %v447_v11 = vpack.c.bf16 %v123_v10, %v122_v9  ;;  %v451_v14 = vpack.c.bf16 %v125_v13, %v124_v12  ;;  %v126_v15 = vld [vmem:[#allocation2 + $0xc0] sm:$0xff]  ;;  %v127_v16 = vld [vmem:[#allocation2 + $0xc8] sm:$0xff]  ;;  %v128_v18 = vld [vmem:[#allocation2 + $0xd0] sm:$0xff] }
  0x17   :  { %440 = vmatprep.subr.bf16.mxu1 %v439_v6  ;;  %v455_v17 = vpack.c.bf16 %v127_v16, %v126_v15  ;;  %v129_v19 = vld [vmem:[#allocation2 + $0xd8] sm:$0xff]  ;;  %v130_v21 = vld [vmem:[#allocation2 + $0xe0] sm:$0xff]  ;;  %v131_v22 = vld [vmem:[#allocation2 + $0xe8] sm:$0xff] }
  0x18   :  { %442 = vmatpush3.bf16.msra.mxu1 %v439_v6  ;;  %v459_v20 = vpack.c.bf16 %v129_v19, %v128_v18  ;;  %v463_v23 = vpack.c.bf16 %v131_v22, %v130_v21  ;;  %v132_v24 = vld [vmem:[#allocation2 + $0xf0] sm:$0xff]  ;;  %v133_v25 = vld [vmem:[#allocation2 + $0xf8] sm:$0xff]  ;;  %v217_v27 = vld [vmem:[#allocation2 + $0x100] sm:$0xff] }
  0x19   :  { %444 = vmatprep.subr.bf16.mxu1 %v443_v8  ;;  %v467_v26 = vpack.c.bf16 %v133_v25, %v132_v24  ;;  %v218_v28 = vld [vmem:[#allocation2 + $0x108] sm:$0xff]  ;;  %v219_v29 = vld [vmem:[#allocation2 + $0x110] sm:$0xff]  ;;  %v220_v31 = vld [vmem:[#allocation2 + $0x118] sm:$0xff] }
  0x1a   :  { %v471_v30 = vpack.c.bf16 %v218_v28, %v217_v27  ;;  %v475_v32 = vpack.c.bf16 %v220_v31, %v219_v29  ;;  %v221_v33 = vld [vmem:[#allocation2 + $0x120] sm:$0xff]  ;;  %v222_v34 = vld [vmem:[#allocation2 + $0x128] sm:$0xff]  ;;  %v223_v36 = vld [vmem:[#allocation2 + $0x130] sm:$0xff] }
  0x1b   :  { %v479_v35 = vpack.c.bf16 %v222_v34, %v221_v33  ;;  %v224_v37 = vld [vmem:[#allocation2 + $0x138] sm:$0xff]  ;;  %v225_v39 = vld [vmem:[#allocation2 + $0x140] sm:$0xff]  ;;  %v226_v40 = vld [vmem:[#allocation2 + $0x148] sm:$0xff] }
  0x1c   :  { %446 = vmatpush3.bf16.msra.mxu1 %v443_v8  ;;  %472 = vmatprep.subr.bf16.mxu0 %v471_v30  ;;  %v483_v38 = vpack.c.bf16 %v224_v37, %v223_v36  ;;  %v487_v41 = vpack.c.bf16 %v226_v40, %v225_v39  ;;  %v227_v42 = vld [vmem:[#allocation2 + $0x150] sm:$0xff]  ;;  %v228_v43 = vld [vmem:[#allocation2 + $0x158] sm:$0xff]  ;;  %v229_v45 = vld [vmem:[#allocation2 + $0x160] sm:$0xff] }
  0x1d   :  { %448 = vmatprep.subr.bf16.mxu1 %v447_v11  ;;  %474 = vmatpush3.bf16.msra.mxu0 %v471_v30  ;;  %v491_v44 = vpack.c.bf16 %v228_v43, %v227_v42  ;;  %v230_v46 = vld [vmem:[#allocation2 + $0x168] sm:$0xff]  ;;  %v320_v48 = vld [vmem:[#allocation2 + $0x40] ss:$0 sm:$0xff]  ;;  %v231_v55 = vld [vmem:[#allocation2 + $0x170] sm:$0xff] }
  0x1e   :  { %476 = vmatprep.subr.bf16.mxu0 %v475_v32  ;;  %v495_v47 = vpack.c.bf16 %v230_v46, %v229_v45  ;;  %v232_v56 = vld [vmem:[#allocation2 + $0x178] sm:$0xff]  ;;  %v323_v58 = vld [vmem:[#allocation2 + $0xc0] ss:$0 sm:$0xff] }
  0x1f   :  { %v499_v57 = vpack.c.bf16 %v232_v56, %v231_v55  ;;  %v324_v1 = vld [vmem:[#allocation2 + $0x140] ss:$0 sm:$0xff] }
  0x20   :  { %450 = vmatpush3.bf16.msra.mxu1 %v447_v11 }
  0x21   :  { %452 = vmatprep.subr.bf16.mxu1 %v451_v14  ;;  %478 = vmatpush3.bf16.msra.mxu0 %v475_v32 }
  0x22   :  { %480 = vmatprep.subr.bf16.mxu0 %v479_v35 }
  0x24   :  { %454 = vmatpush3.bf16.msra.mxu1 %v451_v14 }
  0x25   :  { %456 = vmatprep.subr.bf16.mxu1 %v455_v17  ;;  %482 = vmatpush3.bf16.msra.mxu0 %v479_v35 }
  0x26   :  { %484 = vmatprep.subr.bf16.mxu0 %v483_v38 }
  0x28   :  { %458 = vmatpush3.bf16.msra.mxu1 %v455_v17 }
  0x29   :  { %460 = vmatprep.subr.bf16.mxu1 %v459_v20  ;;  %486 = vmatpush3.bf16.msra.mxu0 %v483_v38 }
  0x2a   :  { %488 = vmatprep.subr.bf16.mxu0 %v487_v41 }
  0x2c   :  { %462 = vmatpush3.bf16.msra.mxu1 %v459_v20 }
  0x2d   :  { %464 = vmatprep.subr.bf16.mxu1 %v463_v23  ;;  %490 = vmatpush3.bf16.msra.mxu0 %v487_v41 }
  0x2e   :  { %492 = vmatprep.subr.bf16.mxu0 %v491_v44 }
  0x30   :  { %466 = vmatpush3.bf16.msra.mxu1 %v463_v23 }
  0x31   :  { %468 = vmatprep.subr.bf16.mxu1 %v467_v26  ;;  %494 = vmatpush3.bf16.msra.mxu0 %v491_v44 }
  0x32   :  { %496 = vmatprep.subr.bf16.mxu0 %v495_v47 }
  0x34   :  { %470 = vmatpush3.bf16.msra.mxu1 %v467_v26 }
  0x35   :  { %498 = vmatpush3.bf16.msra.mxu0 %v495_v47 }
  0x36   :  { %500 = vmatprep.subr.bf16.mxu0 %v499_v57 }
  0x39   :  { %502 = vmatpush3.bf16.msra.mxu0 %v499_v57 }
  0xe8   :  { %v368_v49 = vpop.f32.mrb[0].mxu0 }
  0xe9   :  { %v112_v50 = vadd.f32 %v368_v49, %v320_v48  ;;  %v106_v51 = vpop.f32.mrb[1].mxu0 }
  0xea   :  { %v107_v52 = vadd.f32 %v320_v48, %v106_v51 }
  0xeb   :  { %v116_v54 = vmax.f32 %v112_v50, 0.0 }
  0xec   :  { %v115_v53 = vmax.f32 %v107_v52, 0.0 }
  0xee   :  { %401 = vmatprep.mubr.f32.mxu1 %v115_v53 }
  0xef   :  { %402 = vmatmul.mubr.f32.vlgmr.msra.gmra.mrb[0].mxu1 %v116_v54 }
 0x1c2   :  { %v403_v59 = vpop.f32.mrb[0].mxu1 }
 0x1c3   :  { %v211_v60 = vadd.f32 %v403_v59, %v323_v58  ;;  %v205_v61 = vpop.f32.mrb[1].mxu1 }
 0x1c4   :  { %v206_v62 = vadd.f32 %v323_v58, %v205_v61 }
 0x1c5   :  { %v215_v0 = vmax.f32 %v211_v60, 0.0 }
 0x1c6   :  { %v214_v63 = vmax.f32 %v206_v62, 0.0 }
 0x1c8   :  { %436 = vmatprep.mubr.f32.mxu0 %v214_v63 }
 0x1c9   :  { %437 = vmatmul.mubr.f32.vlgmr.msra.gmra.mrb[2].mxu0 %v215_v0 }
 0x29c   :  { %v438_v2 = vpop.f32.mrb[2].mxu0 }
 0x29d   :  { %v310_v3 = vadd.f32 %v438_v2, %v324_v1  ;;  %v304_v4 = vpop.f32.mrb[3].mxu0 }
 0x29e   :  { %v305_v5 = vadd.f32 %v324_v1, %v304_v4 }
 0x29f   :  { %314 = vst.msk [vmem:[%s578_s2 + $0x8] sm:$0xff] %vm33_vm0, %v310_v3 }
 0x2a0   :  { %313 = vst.msk [vmem:[%s578_s2] sm:$0xff] %vm33_vm0, %v305_v5 }
 0x2a1   :  { %319 = vsyncpa [#allocation3], 1 }

</bundles_post_ra>
